<compile_context>
chip_gen: v5e
topology: v5e:2x2
jax: 0.10.0
libtpu: 0.0.40
codegen_flags: <defaults>
</compile_context>

<pallas_src>
import functools

import jax
import jax.numpy as jnp
from jax import lax
from jax.experimental import pallas as pl
from jax.experimental.pallas import tpu as pltpu


def _encoder_conv_kernel(x_ref, emb_ref, t1_ref, o1_ref, t2_ref, o2_ref,
                         out_ref, pad1_ref, pad2_ref, *, bb, hp, wp, ci, co):
    l1 = (wp + 2) * ci          # flattened padded-row length, conv1
    l2 = (wp + 2) * co          # flattened padded-row length, conv2
    n = wp * co                 # packed (width, channel) output lane width
    m = bb * hp                 # matmul rows = batch-block * spatial rows

    # ---- MaxPool2d(2): max over the 4 pre-unfolded window positions (f32 VPU) ----------
    xw = x_ref[...]                                             # (bb, 4, hp, wp*ci)
    pooled = jnp.maximum(jnp.maximum(xw[:, 0], xw[:, 1]),
                         jnp.maximum(xw[:, 2], xw[:, 3]))       # (bb, hp, wp*ci)

    def pad_store(pad_ref, act, cin):
        # 'SAME' zero padding, lane-dense: top/bottom rows zeroed full-width, interior rows
        # written as one dense store [0-col | act | 0-col].  The whole scratch is rewritten
        # each step, so no cross-step (megacore) state is carried.
        L = (wp + 2) * cin
        zrow = jnp.zeros((bb, 1, L), jnp.float32)
        zcol = jnp.zeros((bb, hp, cin), jnp.float32)
        pad_ref[:, 0:1, :] = zrow
        pad_ref[:, hp + 1:hp + 2, :] = zrow
        pad_ref[:, 1:hp + 1, :] = jnp.concatenate([zcol, act, zcol], axis=-1)

    def conv_bn_relu(pad_ref, t_ref, o_ref, L):
        # 3x3 conv as 3 row-shifted block-Toeplitz matmuls (bf16 operands, f32 accumulate).
        parts = []
        for di in range(3):                               # static unroll
            lhs = pad_ref[:, di:di + hp, :].reshape(m, L).astype(jnp.bfloat16)
            parts.append(jnp.dot(lhs, t_ref[di],
                                 preferred_element_type=jnp.float32))
        acc = parts[0] + parts[1] + parts[2]              # (m, wp*co) f32
        # conv bias + eval-BN offset fused into one per-(j,channel) row; ReLU in f32.
        return jnp.maximum(acc + o_ref[...], 0.0)

    pad_store(pad1_ref, pooled, ci)
    h = conv_bn_relu(pad1_ref, t1_ref, o1_ref, l1)        # (m, wp*co)

    pad_store(pad2_ref, h.reshape(bb, hp, n), co)
    h = conv_bn_relu(pad2_ref, t2_ref, o2_ref, l2)        # (m, wp*co)

    # ---- + time embedding (Linear computed in glue), broadcast over spatial rows -------
    y = h.reshape(bb, hp, n) + emb_ref[...]               # (bb, hp, wp*co)
    out_ref[...] = y.astype(out_ref.dtype)                # exact-size packed store


def _pick_block_batch(B, hp, target_rows):
    """Images per grid step: keep >=2 grid steps when B allows (so the 'parallel' axis can
    shard across v7x's two TensorCores) and keep matmul rows bb*hp <= target_rows."""
    best = 1
    for cand in range(1, B + 1):
        if B % cand:
            continue
        if B >= 2 and B // cand < 2:
            continue
        if cand > 1 and cand * hp > target_rows:
            continue
        best = cand
    return best


def _prep_toeplitz(w, b, g, beta, mu, var, wp, eps=1e-5):
    """(O, I, 3, 3) conv weight + eval-BN -> 3 block-Toeplitz matrices ((wp+2)*I, wp*O) in
    bf16 (BN scale folded in) and a fused per-channel offset row (1, wp*O) in f32."""
    co_, ci_ = w.shape[0], w.shape[1]
    s = g / jnp.sqrt(var + eps)                                     # (co,)
    ws = (w * s[:, None, None, None]).astype(jnp.float32)           # (co, ci, 3, 3)
    off = ((b - mu) * s + beta).astype(jnp.float32)                 # (co,)

    eye = jnp.eye(wp, dtype=jnp.float32)
    ts = []
    for di in range(3):
        t = jnp.zeros(((wp + 2) * ci_, wp * co_), jnp.float32)
        for dj in range(3):
            # D[p*ci + c, q*co + o] = (p == q) * ws[o, c, di, dj]; shift rows down by dj*ci.
            blk = jnp.einsum('pq,oc->pcqo', eye, ws[:, :, di, dj])
            blk = blk.reshape(wp * ci_, wp * co_)
            t = t + jnp.pad(blk, ((dj * ci_, (2 - dj) * ci_), (0, 0)))
        ts.append(t)
    T = jnp.stack(ts, axis=0).astype(jnp.bfloat16)                  # (3, (wp+2)*ci, wp*co)
    off_row = jnp.tile(off, wp).reshape(1, wp * co_)                # (1, wp*co) f32
    return T, off_row


def encoder_conv_pallas(x, t, params):
    (w1, b1, g1, bb1, m1, v1,
     w2, b2, g2, bb2, m2, v2,
     we, be) = params
    B, ci, H, W = x.shape
    co = w1.shape[0]

    # PyTorch MaxPool2d(2) floors odd spatial sizes: crop to even first.
    H2, W2 = (H // 2) * 2, (W // 2) * 2
    if (H2, W2) != (H, W):
        x = x[:, :, :H2, :W2]
    hp, wp = H2 // 2, W2 // 2

    # Generation-aware VMEM budget (v7x 64 MiB physical vs 128 MiB on v5e/v6e).
    try:
        vmem_cap = int(pltpu.get_tpu_info().vmem_capacity_bytes)
    except Exception:
        vmem_cap = 64 * 2 ** 20
    target_rows = 256 if vmem_cap <= 64 * 2 ** 20 else 512
    bb = _pick_block_batch(B, hp, target_rows)

    # glue: unfold 2x2 pooling windows, NCHW -> lane-dense (B, 4, hp, wp*ci).
    x_nhwc = jnp.transpose(x, (0, 2, 3, 1)).astype(jnp.float32)
    x_win = x_nhwc.reshape(B, hp, 2, wp, 2, ci).transpose(0, 2, 4, 1, 3, 5)
    x_win = x_win.reshape(B, 4, hp, wp * ci)

    # glue: block-Toeplitz conv weights (BN folded) + fused per-channel offsets.
    T1, o1 = _prep_toeplitz(w1, b1, g1, bb1, m1, v1, wp)
    T2, o2 = _prep_toeplitz(w2, b2, g2, bb2, m2, v2, wp)

    # glue: time-embedding Linear (plain XLA matmul), tiled across the packed lane axis.
    emb = t.astype(jnp.float32) @ we.T.astype(jnp.float32) + be.astype(jnp.float32)
    emb = jnp.tile(emb, (1, wp)).reshape(B, 1, wp * co)

    n = wp * co
    l1, l2 = (wp + 2) * ci, (wp + 2) * co

    # Live-set VMEM estimate: double-buffered in/out blocks + persistent pad scratch +
    # in-flight temporaries (pooled / concat row block / accumulators).
    blk_bytes = (2 * 4 * bb * 4 * hp * wp * ci          # x_win blocks
                 + 2 * 4 * bb * n                        # emb blocks
                 + 2 * (2 * 3 * l1 * n + 4 * n)          # T1 (bf16) + o1
                 + 2 * (2 * 3 * l2 * n + 4 * n)          # T2 (bf16) + o2
                 + 2 * 4 * bb * hp * n                   # out blocks
                 + 4 * bb * (hp + 2) * (l1 + l2)         # pad scratches (f32)
                 + 4 * 4 * bb * hp * max(l1, l2, n))     # temporaries
    vmem_limit = int(min(int(0.75 * vmem_cap), max(8 * 2 ** 20, 4 * blk_bytes)))

    kernel = functools.partial(_encoder_conv_kernel, bb=bb, hp=hp, wp=wp, ci=ci, co=co)
    out = pl.pallas_call(
        kernel,
        out_shape=jax.ShapeDtypeStruct((B, hp, n), jnp.float32),
        grid_spec=pltpu.PrefetchScalarGridSpec(
            num_scalar_prefetch=0,
            grid=(B // bb,),
            in_specs=[
                pl.BlockSpec((bb, 4, hp, wp * ci), lambda b: (b, 0, 0, 0)),
                pl.BlockSpec((bb, 1, n), lambda b: (b, 0, 0)),
                pl.BlockSpec((3, l1, n), lambda b: (0, 0, 0)),
                pl.BlockSpec((1, n), lambda b: (0, 0)),
                pl.BlockSpec((3, l2, n), lambda b: (0, 0, 0)),
                pl.BlockSpec((1, n), lambda b: (0, 0)),
            ],
            out_specs=pl.BlockSpec((bb, hp, n), lambda b: (b, 0, 0)),
            scratch_shapes=[
                pltpu.VMEM((bb, hp + 2, l1), jnp.float32),
                pltpu.VMEM((bb, hp + 2, l2), jnp.float32),
            ],
        ),
        compiler_params=pltpu.CompilerParams(
            dimension_semantics=("parallel",),
            vmem_limit_bytes=vmem_limit),
    )(x_win, emb, T1, o1, T2, o2)

    # glue: (B, hp, wp*co) packed -> NCHW (B, co, hp, wp).
    out = out.reshape(B, hp, wp, co)
    return jnp.transpose(out, (0, 3, 1, 2))


def encoder_conv_reference(x, t, params):
    """Pure-JAX f32 reference matching the PyTorch module (BatchNorm in eval mode)."""
    (w1, b1, g1, bb1, m1, v1,
     w2, b2, g2, bb2, m2, v2,
     we, be) = params
    eps = 1e-5
    h = lax.reduce_window(x, -jnp.inf, lax.max, (1, 1, 2, 2), (1, 1, 2, 2), 'VALID')

    def conv_bn_relu(h, w, b, g, bb, m, v):
        y = lax.conv_general_dilated(h, w, (1, 1), 'SAME',
                                     dimension_numbers=('NCHW', 'OIHW', 'NCHW'))
        y = y + b[None, :, None, None]
        y = (y - m[None, :, None, None]) / jnp.sqrt(v[None, :, None, None] + eps)
        y = y * g[None, :, None, None] + bb[None, :, None, None]
        return jnp.maximum(y, 0.0)

    h = conv_bn_relu(h, w1, b1, g1, bb1, m1, v1)
    h = conv_bn_relu(h, w2, b2, g2, bb2, m2, v2)
    e = t @ we.T + be
    return h + e[:, :, None, None]


if __name__ == "__main__":
    B, ci, co, E, H, W = 2, 4, 8, 32, 16, 16
    ks = jax.random.split(jax.random.PRNGKey(0), 16)
    x = jax.random.normal(ks[0], (B, ci, H, W), jnp.float32)
    t = jax.random.normal(ks[1], (B, E), jnp.float32)

    w1 = 0.2 * jax.random.normal(ks[2], (co, ci, 3, 3), jnp.float32)
    b1 = 0.1 * jax.random.normal(ks[3], (co,), jnp.float32)
    g1 = 1.0 + 0.1 * jax.random.normal(ks[4], (co,), jnp.float32)
    bb1 = 0.1 * jax.random.normal(ks[5], (co,), jnp.float32)
    m1 = 0.1 * jax.random.normal(ks[6], (co,), jnp.float32)
    v1 = jax.random.uniform(ks[7], (co,), jnp.float32, 0.5, 1.5)

    w2 = 0.2 * jax.random.normal(ks[8], (co, co, 3, 3), jnp.float32)
    b2 = 0.1 * jax.random.normal(ks[9], (co,), jnp.float32)
    g2 = 1.0 + 0.1 * jax.random.normal(ks[10], (co,), jnp.float32)
    bb2 = 0.1 * jax.random.normal(ks[11], (co,), jnp.float32)
    m2 = 0.1 * jax.random.normal(ks[12], (co,), jnp.float32)
    v2 = jax.random.uniform(ks[13], (co,), jnp.float32, 0.5, 1.5)

    we = 0.2 * jax.random.normal(ks[14], (co, E), jnp.float32)
    be = 0.1 * jax.random.normal(ks[15], (co,), jnp.float32)

    params = (w1, b1, g1, bb1, m1, v1, w2, b2, g2, bb2, m2, v2, we, be)

    out = jax.block_until_ready(encoder_conv_pallas(x, t, params))
    ref = jax.block_until_ready(encoder_conv_reference(x, t, params))

    assert out.shape == (B, co, H // 2, W // 2), out.shape
    err = jnp.max(jnp.abs(out - ref))
    # bf16 matmul operands (f32 accumulate) vs. f32 reference -> loosened tolerance,
    # as anticipated in the performance review.
    if not jnp.allclose(out, ref, atol=5e-2, rtol=5e-2):
        raise AssertionError(f"Pallas kernel mismatch vs reference, max abs err = {err}")
    print("KERNEL_OK")
</pallas_src>

<mosaic_0001>
module attributes {stable_mosaic.version = 11 : i64} {
  func.func @_encoder_conv_kernel(%arg0: i32, %arg1: memref<1x4x8x32xf32, #tpu.memory_space<vmem>>, %arg2: memref<1x1x64xf32, #tpu.memory_space<vmem>>, %arg3: memref<3x40x64xbf16, #tpu.memory_space<vmem>>, %arg4: memref<1x64xf32, #tpu.memory_space<vmem>>, %arg5: memref<3x80x64xbf16, #tpu.memory_space<vmem>>, %arg6: memref<1x64xf32, #tpu.memory_space<vmem>>, %arg7: memref<1x8x64xf32, #tpu.memory_space<vmem>>, %arg8: memref<1x10x40xf32, #tpu.memory_space<vmem>>, %arg9: memref<1x10x80xf32, #tpu.memory_space<vmem>>) attributes {dimension_semantics = [#tpu.dimension_semantics<parallel>], iteration_bounds = array<i64: 2>, scalar_prefetch = 0 : i64, scratch_operands = 2 : i64, tpu.core_type = #tpu.core_type<tc>, window_params = [{transform_indices = @transform_0, window_bounds = array<i64: 1, 4, 8, 32>}, {transform_indices = @transform_1, window_bounds = array<i64: 1, 1, 64>}, {pipeline_mode = #tpu.pipeline_mode<synchronous>, transform_indices = @transform_2, window_bounds = array<i64: 3, 40, 64>}, {pipeline_mode = #tpu.pipeline_mode<synchronous>, transform_indices = @transform_3, window_bounds = array<i64: 1, 64>}, {pipeline_mode = #tpu.pipeline_mode<synchronous>, transform_indices = @transform_4, window_bounds = array<i64: 3, 80, 64>}, {pipeline_mode = #tpu.pipeline_mode<synchronous>, transform_indices = @transform_5, window_bounds = array<i64: 1, 64>}, {transform_indices = @transform_6, window_bounds = array<i64: 1, 8, 64>}]} {
    %c0 = arith.constant 0 : index
    %c0_0 = arith.constant 0 : index
    %c0_1 = arith.constant 0 : index
    %c0_2 = arith.constant 0 : index
    %0 = vector.load %arg1[%c0, %c0_0, %c0_1, %c0_2] : memref<1x4x8x32xf32, #tpu.memory_space<vmem>>, vector<1x4x8x32xf32>
    %1 = vector.extract_strided_slice %0 {offsets = [0, 0, 0, 0], sizes = [1, 1, 8, 32], strides = [1, 1, 1, 1]} : vector<1x4x8x32xf32> to vector<1x1x8x32xf32>
    %2 = vector.shape_cast %1 : vector<1x1x8x32xf32> to vector<1x8x32xf32>
    %3 = vector.extract_strided_slice %0 {offsets = [0, 1, 0, 0], sizes = [1, 1, 8, 32], strides = [1, 1, 1, 1]} : vector<1x4x8x32xf32> to vector<1x1x8x32xf32>
    %4 = vector.shape_cast %3 : vector<1x1x8x32xf32> to vector<1x8x32xf32>
    %5 = arith.maximumf %2, %4 : vector<1x8x32xf32>
    %6 = vector.extract_strided_slice %0 {offsets = [0, 2, 0, 0], sizes = [1, 1, 8, 32], strides = [1, 1, 1, 1]} : vector<1x4x8x32xf32> to vector<1x1x8x32xf32>
    %7 = vector.shape_cast %6 : vector<1x1x8x32xf32> to vector<1x8x32xf32>
    %8 = vector.extract_strided_slice %0 {offsets = [0, 3, 0, 0], sizes = [1, 1, 8, 32], strides = [1, 1, 1, 1]} : vector<1x4x8x32xf32> to vector<1x1x8x32xf32>
    %9 = vector.shape_cast %8 : vector<1x1x8x32xf32> to vector<1x8x32xf32>
    %10 = arith.maximumf %7, %9 : vector<1x8x32xf32>
    %11 = arith.maximumf %5, %10 : vector<1x8x32xf32>
    %cst = arith.constant 0.000000e+00 : f32
    %12 = vector.broadcast %cst : f32 to vector<1x1x40xf32>
    %cst_3 = arith.constant 0.000000e+00 : f32
    %13 = vector.broadcast %cst_3 : f32 to vector<1x8x4xf32>
    %c0_4 = arith.constant 0 : index
    %c0_5 = arith.constant 0 : index
    %c0_6 = arith.constant 0 : index
    %14 = vector.load %arg8[%c0_4, %c0_5, %c0_6] : memref<1x10x40xf32, #tpu.memory_space<vmem>>, vector<1x1x40xf32>
    tpu.vector_store %arg8[%c0_4, %c0_5, %c0_6], %12 {strides = array<i32>} : memref<1x10x40xf32, #tpu.memory_space<vmem>>, vector<1x1x40xf32>,
    %c0_7 = arith.constant 0 : index
    %c9 = arith.constant 9 : index
    %c0_8 = arith.constant 0 : index
    %15 = vector.load %arg8[%c0_7, %c9, %c0_8] : memref<1x10x40xf32, #tpu.memory_space<vmem>>, vector<1x1x40xf32>
    tpu.vector_store %arg8[%c0_7, %c9, %c0_8], %12 {strides = array<i32>} : memref<1x10x40xf32, #tpu.memory_space<vmem>>, vector<1x1x40xf32>,
    %16 = tpu.concatenate %13, %11, %13 in 2 : vector<1x8x4xf32>, vector<1x8x32xf32>, vector<1x8x4xf32> -> vector<1x8x40xf32>
    %c0_9 = arith.constant 0 : index
    %c1 = arith.constant 1 : index
    %c0_10 = arith.constant 0 : index
    %17 = vector.load %arg8[%c0_9, %c1, %c0_10] : memref<1x10x40xf32, #tpu.memory_space<vmem>>, vector<1x8x40xf32>
    tpu.vector_store %arg8[%c0_9, %c1, %c0_10], %16 {strides = array<i32>} : memref<1x10x40xf32, #tpu.memory_space<vmem>>, vector<1x8x40xf32>,
    %c0_11 = arith.constant 0 : index
    %c0_12 = arith.constant 0 : index
    %c0_13 = arith.constant 0 : index
    %18 = vector.load %arg8[%c0_11, %c0_12, %c0_13] : memref<1x10x40xf32, #tpu.memory_space<vmem>>, vector<1x8x40xf32>
    %19 = vector.shape_cast %18 : vector<1x8x40xf32> to vector<8x40xf32>
    %20 = arith.truncf %19 : vector<8x40xf32> to vector<8x40xbf16>
    %c0_14 = arith.constant 0 : index
    %c0_15 = arith.constant 0 : index
    %c0_16 = arith.constant 0 : index
    %21 = vector.load %arg3[%c0_14, %c0_15, %c0_16] : memref<3x40x64xbf16, #tpu.memory_space<vmem>>, vector<1x40x64xbf16>
    %22 = vector.shape_cast %21 : vector<1x40x64xbf16> to vector<40x64xbf16>
    %cst_17 = arith.constant dense<0.000000e+00> : vector<8x64xf32>
    %23 = tpu.matmul %20, %22, %cst_17 {dimension_numbers = #tpu.dot_dimension_numbers<[1], [0], [0], [1], [0, 0, 1, 1], [], []>} : vector<8x40xbf16>, vector<40x64xbf16>, vector<8x64xf32> -> vector<8x64xf32>
    %c0_18 = arith.constant 0 : index
    %c1_19 = arith.constant 1 : index
    %c0_20 = arith.constant 0 : index
    %24 = vector.load %arg8[%c0_18, %c1_19, %c0_20] : memref<1x10x40xf32, #tpu.memory_space<vmem>>, vector<1x8x40xf32>
    %25 = vector.shape_cast %24 : vector<1x8x40xf32> to vector<8x40xf32>
    %26 = arith.truncf %25 : vector<8x40xf32> to vector<8x40xbf16>
    %c1_21 = arith.constant 1 : index
    %c0_22 = arith.constant 0 : index
    %c0_23 = arith.constant 0 : index
    %27 = vector.load %arg3[%c1_21, %c0_22, %c0_23] : memref<3x40x64xbf16, #tpu.memory_space<vmem>>, vector<1x40x64xbf16>
    %28 = vector.shape_cast %27 : vector<1x40x64xbf16> to vector<40x64xbf16>
    %cst_24 = arith.constant dense<0.000000e+00> : vector<8x64xf32>
    %29 = tpu.matmul %26, %28, %cst_24 {dimension_numbers = #tpu.dot_dimension_numbers<[1], [0], [0], [1], [0, 0, 1, 1], [], []>} : vector<8x40xbf16>, vector<40x64xbf16>, vector<8x64xf32> -> vector<8x64xf32>
    %c0_25 = arith.constant 0 : index
    %c2 = arith.constant 2 : index
    %c0_26 = arith.constant 0 : index
    %30 = vector.load %arg8[%c0_25, %c2, %c0_26] : memref<1x10x40xf32, #tpu.memory_space<vmem>>, vector<1x8x40xf32>
    %31 = vector.shape_cast %30 : vector<1x8x40xf32> to vector<8x40xf32>
    %32 = arith.truncf %31 : vector<8x40xf32> to vector<8x40xbf16>
    %c2_27 = arith.constant 2 : index
    %c0_28 = arith.constant 0 : index
    %c0_29 = arith.constant 0 : index
    %33 = vector.load %arg3[%c2_27, %c0_28, %c0_29] : memref<3x40x64xbf16, #tpu.memory_space<vmem>>, vector<1x40x64xbf16>
    %34 = vector.shape_cast %33 : vector<1x40x64xbf16> to vector<40x64xbf16>
    %cst_30 = arith.constant dense<0.000000e+00> : vector<8x64xf32>
    %35 = tpu.matmul %32, %34, %cst_30 {dimension_numbers = #tpu.dot_dimension_numbers<[1], [0], [0], [1], [0, 0, 1, 1], [], []>} : vector<8x40xbf16>, vector<40x64xbf16>, vector<8x64xf32> -> vector<8x64xf32>
    %36 = arith.addf %23, %29 : vector<8x64xf32>
    %37 = arith.addf %36, %35 : vector<8x64xf32>
    %c0_31 = arith.constant 0 : index
    %c0_32 = arith.constant 0 : index
    %38 = vector.load %arg4[%c0_31, %c0_32] : memref<1x64xf32, #tpu.memory_space<vmem>>, vector<1x64xf32>
    %39 = vector.broadcast %38 : vector<1x64xf32> to vector<8x64xf32>
    %40 = arith.addf %37, %39 : vector<8x64xf32>
    %cst_33 = arith.constant 0.000000e+00 : f32
    %41 = vector.broadcast %cst_33 : f32 to vector<8x64xf32>
    %42 = arith.maximumf %40, %41 : vector<8x64xf32>
    %43 = vector.shape_cast %42 : vector<8x64xf32> to vector<1x8x64xf32>
    %cst_34 = arith.constant 0.000000e+00 : f32
    %44 = vector.broadcast %cst_34 : f32 to vector<1x1x80xf32>
    %cst_35 = arith.constant 0.000000e+00 : f32
    %45 = vector.broadcast %cst_35 : f32 to vector<1x8x8xf32>
    %c0_36 = arith.constant 0 : index
    %c0_37 = arith.constant 0 : index
    %c0_38 = arith.constant 0 : index
    %46 = vector.load %arg9[%c0_36, %c0_37, %c0_38] : memref<1x10x80xf32, #tpu.memory_space<vmem>>, vector<1x1x80xf32>
    tpu.vector_store %arg9[%c0_36, %c0_37, %c0_38], %44 {strides = array<i32>} : memref<1x10x80xf32, #tpu.memory_space<vmem>>, vector<1x1x80xf32>,
    %c0_39 = arith.constant 0 : index
    %c9_40 = arith.constant 9 : index
    %c0_41 = arith.constant 0 : index
    %47 = vector.load %arg9[%c0_39, %c9_40, %c0_41] : memref<1x10x80xf32, #tpu.memory_space<vmem>>, vector<1x1x80xf32>
    tpu.vector_store %arg9[%c0_39, %c9_40, %c0_41], %44 {strides = array<i32>} : memref<1x10x80xf32, #tpu.memory_space<vmem>>, vector<1x1x80xf32>,
    %48 = tpu.concatenate %45, %43, %45 in 2 : vector<1x8x8xf32>, vector<1x8x64xf32>, vector<1x8x8xf32> -> vector<1x8x80xf32>
    %c0_42 = arith.constant 0 : index
    %c1_43 = arith.constant 1 : index
    %c0_44 = arith.constant 0 : index
    %49 = vector.load %arg9[%c0_42, %c1_43, %c0_44] : memref<1x10x80xf32, #tpu.memory_space<vmem>>, vector<1x8x80xf32>
    tpu.vector_store %arg9[%c0_42, %c1_43, %c0_44], %48 {strides = array<i32>} : memref<1x10x80xf32, #tpu.memory_space<vmem>>, vector<1x8x80xf32>,
    %c0_45 = arith.constant 0 : index
    %c0_46 = arith.constant 0 : index
    %c0_47 = arith.constant 0 : index
    %50 = vector.load %arg9[%c0_45, %c0_46, %c0_47] : memref<1x10x80xf32, #tpu.memory_space<vmem>>, vector<1x8x80xf32>
    %51 = vector.shape_cast %50 : vector<1x8x80xf32> to vector<8x80xf32>
    %52 = arith.truncf %51 : vector<8x80xf32> to vector<8x80xbf16>
    %c0_48 = arith.constant 0 : index
    %c0_49 = arith.constant 0 : index
    %c0_50 = arith.constant 0 : index
    %53 = vector.load %arg5[%c0_48, %c0_49, %c0_50] : memref<3x80x64xbf16, #tpu.memory_space<vmem>>, vector<1x80x64xbf16>
    %54 = vector.shape_cast %53 : vector<1x80x64xbf16> to vector<80x64xbf16>
    %cst_51 = arith.constant dense<0.000000e+00> : vector<8x64xf32>
    %55 = tpu.matmul %52, %54, %cst_51 {dimension_numbers = #tpu.dot_dimension_numbers<[1], [0], [0], [1], [0, 0, 1, 1], [], []>} : vector<8x80xbf16>, vector<80x64xbf16>, vector<8x64xf32> -> vector<8x64xf32>
    %c0_52 = arith.constant 0 : index
    %c1_53 = arith.constant 1 : index
    %c0_54 = arith.constant 0 : index
    %56 = vector.load %arg9[%c0_52, %c1_53, %c0_54] : memref<1x10x80xf32, #tpu.memory_space<vmem>>, vector<1x8x80xf32>
    %57 = vector.shape_cast %56 : vector<1x8x80xf32> to vector<8x80xf32>
    %58 = arith.truncf %57 : vector<8x80xf32> to vector<8x80xbf16>
    %c1_55 = arith.constant 1 : index
    %c0_56 = arith.constant 0 : index
    %c0_57 = arith.constant 0 : index
    %59 = vector.load %arg5[%c1_55, %c0_56, %c0_57] : memref<3x80x64xbf16, #tpu.memory_space<vmem>>, vector<1x80x64xbf16>
    %60 = vector.shape_cast %59 : vector<1x80x64xbf16> to vector<80x64xbf16>
    %cst_58 = arith.constant dense<0.000000e+00> : vector<8x64xf32>
    %61 = tpu.matmul %58, %60, %cst_58 {dimension_numbers = #tpu.dot_dimension_numbers<[1], [0], [0], [1], [0, 0, 1, 1], [], []>} : vector<8x80xbf16>, vector<80x64xbf16>, vector<8x64xf32> -> vector<8x64xf32>
    %c0_59 = arith.constant 0 : index
    %c2_60 = arith.constant 2 : index
    %c0_61 = arith.constant 0 : index
    %62 = vector.load %arg9[%c0_59, %c2_60, %c0_61] : memref<1x10x80xf32, #tpu.memory_space<vmem>>, vector<1x8x80xf32>
    %63 = vector.shape_cast %62 : vector<1x8x80xf32> to vector<8x80xf32>
    %64 = arith.truncf %63 : vector<8x80xf32> to vector<8x80xbf16>
    %c2_62 = arith.constant 2 : index
    %c0_63 = arith.constant 0 : index
    %c0_64 = arith.constant 0 : index
    %65 = vector.load %arg5[%c2_62, %c0_63, %c0_64] : memref<3x80x64xbf16, #tpu.memory_space<vmem>>, vector<1x80x64xbf16>
    %66 = vector.shape_cast %65 : vector<1x80x64xbf16> to vector<80x64xbf16>
    %cst_65 = arith.constant dense<0.000000e+00> : vector<8x64xf32>
    %67 = tpu.matmul %64, %66, %cst_65 {dimension_numbers = #tpu.dot_dimension_numbers<[1], [0], [0], [1], [0, 0, 1, 1], [], []>} : vector<8x80xbf16>, vector<80x64xbf16>, vector<8x64xf32> -> vector<8x64xf32>
    %68 = arith.addf %55, %61 : vector<8x64xf32>
    %69 = arith.addf %68, %67 : vector<8x64xf32>
    %c0_66 = arith.constant 0 : index
    %c0_67 = arith.constant 0 : index
    %70 = vector.load %arg6[%c0_66, %c0_67] : memref<1x64xf32, #tpu.memory_space<vmem>>, vector<1x64xf32>
    %71 = vector.broadcast %70 : vector<1x64xf32> to vector<8x64xf32>
    %72 = arith.addf %69, %71 : vector<8x64xf32>
    %cst_68 = arith.constant 0.000000e+00 : f32
    %73 = vector.broadcast %cst_68 : f32 to vector<8x64xf32>
    %74 = arith.maximumf %72, %73 : vector<8x64xf32>
    %75 = vector.shape_cast %74 : vector<8x64xf32> to vector<1x8x64xf32>
    %c0_69 = arith.constant 0 : index
    %c0_70 = arith.constant 0 : index
    %c0_71 = arith.constant 0 : index
    %76 = vector.load %arg2[%c0_69, %c0_70, %c0_71] : memref<1x1x64xf32, #tpu.memory_space<vmem>>, vector<1x1x64xf32>
    %77 = vector.broadcast %76 : vector<1x1x64xf32> to vector<1x8x64xf32>
    %78 = arith.addf %75, %77 : vector<1x8x64xf32>
    %c0_72 = arith.constant 0 : index
    %c0_73 = arith.constant 0 : index
    %c0_74 = arith.constant 0 : index
    %79 = vector.load %arg7[%c0_72, %c0_73, %c0_74] : memref<1x8x64xf32, #tpu.memory_space<vmem>>, vector<1x8x64xf32>
    tpu.vector_store %arg7[%c0_72, %c0_73, %c0_74], %78 {strides = array<i32>} : memref<1x8x64xf32, #tpu.memory_space<vmem>>, vector<1x8x64xf32>,
    return
  }
  func.func @transform_0(%arg0: i32) -> (i32, i32, i32, i32) {
    %c0_i32 = arith.constant 0 : i32
    %c0_i32_0 = arith.constant 0 : i32
    %c0_i32_1 = arith.constant 0 : i32
    %c0_i32_2 = arith.constant 0 : i32
    return %arg0, %c0_i32, %c0_i32_0, %c0_i32_1 : i32, i32, i32, i32
  }
  func.func @transform_1(%arg0: i32) -> (i32, i32, i32) {
    %c0_i32 = arith.constant 0 : i32
    %c0_i32_0 = arith.constant 0 : i32
    %c0_i32_1 = arith.constant 0 : i32
    return %arg0, %c0_i32, %c0_i32_0 : i32, i32, i32
  }
  func.func @transform_2(%arg0: i32) -> (i32, i32, i32) {
    %c0_i32 = arith.constant 0 : i32
    %c0_i32_0 = arith.constant 0 : i32
    %c0_i32_1 = arith.constant 0 : i32
    %c0_i32_2 = arith.constant 0 : i32
    return %c0_i32, %c0_i32_0, %c0_i32_1 : i32, i32, i32
  }
  func.func @transform_3(%arg0: i32) -> (i32, i32) {
    %c0_i32 = arith.constant 0 : i32
    %c0_i32_0 = arith.constant 0 : i32
    %c0_i32_1 = arith.constant 0 : i32
    return %c0_i32, %c0_i32_0 : i32, i32
  }
  func.func @transform_4(%arg0: i32) -> (i32, i32, i32) {
    %c0_i32 = arith.constant 0 : i32
    %c0_i32_0 = arith.constant 0 : i32
    %c0_i32_1 = arith.constant 0 : i32
    %c0_i32_2 = arith.constant 0 : i32
    return %c0_i32, %c0_i32_0, %c0_i32_1 : i32, i32, i32
  }
  func.func @transform_5(%arg0: i32) -> (i32, i32) {
    %c0_i32 = arith.constant 0 : i32
    %c0_i32_0 = arith.constant 0 : i32
    %c0_i32_1 = arith.constant 0 : i32
    return %c0_i32, %c0_i32_0 : i32, i32
  }
  func.func @transform_6(%arg0: i32) -> (i32, i32, i32) {
    %c0_i32 = arith.constant 0 : i32
    %c0_i32_0 = arith.constant 0 : i32
    %c0_i32_1 = arith.constant 0 : i32
    return %arg0, %c0_i32, %c0_i32_0 : i32, i32, i32
  }
}

</mosaic_0001>

<bundles_post_ra>
// kernel: tpu_custom_call.1
= control target key start
LH: loop header
LB: loop body
LE: loop exit
PB: predicated region body
PF: predicated region fallthrough
CT: control target
= control target key end

     0   :  { %11 = vsyncpa [#allocation5], 0  ;;  %s1182_s0 = inlined_call_operand.vmem [shape: f32[2,4,8,32], index: 0, kind: input, shape index: {}]   ;;  %s1183_s1 = inlined_call_operand.vmem [shape: f32[2,1,64], index: 1, kind: input, shape index: {}]   ;;  %s1184_s2 = inlined_call_operand.vmem [shape: bf16[3,40,64], index: 2, kind: input, shape index: {}]   ;;  %s1185_s3 = inlined_call_operand.vmem [shape: f32[1,64], index: 3, kind: input, shape index: {}]   ;;  %s1186_s4 = inlined_call_operand.vmem [shape: bf16[3,80,64], index: 4, kind: input, shape index: {}]   ;;  %s1187_s5 = inlined_call_operand.vmem [shape: f32[1,64], index: 5, kind: input, shape index: {}]   ;;  %s1188_s6 = inlined_call_operand.hbm [shape: f32[2,8,64], index: 6, kind: output, shape index: {}]  }
   0x1   :  { %13 = vsyncpa [#allocation5 + $0x1], 0  ;;  %s1005_s21 = smov 0   ;;  %s1007_s22 = smov 0  }
   0x2   :  { %s1009_s23 = smov 0   ;;  %s1011_s24 = smov 0  }
   0x3 LB: > { %s1026_s25 = sadd.s32 4294967295, %s965_s24   ;;  %s705_s26 = sadd.s32 4294967294, %s965_s24   ;;  %s965_s24 = sphi %s1011_s24, %s1194_s24   ;;  %s961_s23 = sphi %s1009_s23, %s1193_s23   ;;  %s957_s22 = sphi %s1007_s22, %s1192_s22   ;;  %s953_s21 = sphi %s1005_s21, %s1191_s21  }
   0x4   : > { %s1030_s27 = sadd.s32 1, %s965_s24   ;;  %s162_s28 = sadd.s32 1, %s961_s23 }
   0x5   : > { %s159_s29 = ssub.s32 %s965_s24, %s1030_s27  ;;  %p172_p0 = scmp.ne.s32.totalorder %s961_s23, %s957_s22 }
   0x6   : > { %p160_p1 = scmp.eq.s32.totalorder %s159_s29, 0  ;;  %p173_p2 = scmp.eq.s32.totalorder %s1026_s25, 1 }
   0x7   : > { %p178_p3 = scmp.ne.s32.totalorder %s957_s22, %s953_s21  ;;  %p179_p4 = scmp.eq.s32.totalorder %s705_s26, 1 }
   0x8   : > { %s1041_s30 = scalar_select %p160_p1, %s961_s23, %s162_s28  }
   0x9   : > { %p1043_p5 = por %p173_p2, %p172_p0  ;;  %p1047_p6 = por %p179_p4, %p178_p3 }
   0xa   : > { %p708_p7 = scmp.ge.s32.totalorder %s965_s24, 1  ;;  %p223_p8 = scmp.lt.s32.totalorder %s965_s24, 3 }
   0xc   : > { %p224_p9 = pnand %p708_p7, %p223_p8 }
   0xd   : > { %p256_p10 = scmp.lt.s32.totalorder (!%p224_p9), %s1026_s25, 1  ;;  %s967_s14 = smov (!%p224_p9), 4  }
   0xe   : > { %227 = sbr.rel (%p224_p9) target bundleno = 584 (0x248), region = 44  ;;  %s969_s19 = smov (!%p224_p9), 8  }
   0xf   : > { %s833_s15 = sshll.u32 (!%p224_p9), %s1026_s25, 3 }
  0x13   : > { %s1055_s9 = scalar_select %p256_p10, %s1026_s25, 1  ;;  %v716_v7 = vld [vmem:[%s1184_s2 + $0x24] sm:$0xf]  ;;  %v730_v8 = vld [vmem:[%s1184_s2 + $0x38] sm:$0xf]  ;;  %vm318_vm0 = vcmask 1043456  }
  0x14   : > { %v309_v9 = vunpack.c.l.b16 %v716_v7  ;;  %v352_v10 = vunpack.c.l.b16 %v730_v8  ;;  %vm272_vm1 = vcmask 319488   ;;  %v840_v15 = vld [vmem:[%s1184_s2 + $0x1c] sm:$0xff]  ;;  %v842_v16 = vld [vmem:[%s1184_s2 + $0x30] sm:$0xff]  ;;  %v968_v17 = vmov 0.0   ;;  %v841_v19 = vld [vmem:[%s1184_s2 + $0x28] sm:$0xff] }
  0x15   : > { %s836_s10 = sshll.u32 %s1055_s9, 5  ;;  %273 = vst.msk [vmem:[#allocation2] sm:$0x1] %vm272_vm1, %v968_v17  ;;  %v839_v18 = vld [vmem:[%s1184_s2 + $0x14] sm:$0xff]  ;;  %v291_v20 = vld [vmem:[%s1184_s2 + $0x10] sm:$0xf]  ;;  %s263_s12 = scalar_lea.vmem %s1183_s1, %s1055_s9 }
  0x16   : > { %s260_s13 = scalar_lea.vmem %s1182_s0, %s836_s10  ;;  %v312_v11 = vpack.c.b16 %v309_v9, %v309_v9  ;;  %v355_v12 = vpack.c.b16 %v352_v10, %v352_v10  ;;  %274 = vst.msk [vmem:[#allocation2 + $0x9] sm:$0x1] %vm272_vm1, %v968_v17  ;;  %v386_v21 = vunpack.c.l.b16 %v291_v20  ;;  %v838_v24 = vld [vmem:[%s1184_s2 + $0x8] sm:$0xff]  ;;  %v837_v25 = vld [vmem:[%s1184_s2] sm:$0xff]  ;;  %vm279_vm2 = vcmask 31744   ;;  %v857_v36 = vld [vmem:[%s1186_s4 + $0x70] sm:$0xff]  ;;  %s632_s9 = scalar_lea.hbm %s1188_s6, %s833_s15 }
  0x17   : > { %v265_v0 = vld [vmem:[%s260_s13] sm:$0xff]  ;;  %v266_v1 = vld [vmem:[%s260_s13 + $0x8] sm:$0xff]  ;;  %v267_v2 = vld [vmem:[%s260_s13 + $0x10] sm:$0xff]  ;;  %vm281_vm3 = vcmask 293888   ;;  %vm283_vm4 = vcmask 326656   ;;  %551 = vmatpush.bf16.msra.mxu0 %v857_v36  ;;  %vm418_vm5 = vcmask 647168  }
  0x18   : > { %v268_v3 = vld [vmem:[%s260_s13 + $0x18] sm:$0xff]  ;;  %v269_v4 = vmax.f32 %v265_v0, %v266_v1  ;;  %v320_v13 = vsel %vm318_vm0, %v312_v11, 0  ;;  %v362_v14 = vsel %vm318_vm0, %v355_v12, 0  ;;  %v389_v22 = vpack.c.b16 %v386_v21, %v386_v21  ;;  %v852_v35 = vld [vmem:[%s1186_s4 + $0x48] sm:$0xff]  ;;  %v847_v37 = vld [vmem:[%s1186_s4 + $0x20] sm:$0xff]  ;;  %s253_s13 = sand.u32 1, %s957_s22  }
  0x19   : > { %v270_v5 = vmax.f32 %v267_v2, %v268_v3  ;;  %327 = vmatpush.bf16.msra.mxu2 %v320_v13  ;;  %369 = vmatpush.bf16.msra.mxu1 %v362_v14  ;;  %v851_v39 = vld [vmem:[%s1186_s4 + $0x40] sm:$0xff]  ;;  %v856_v40 = vld [vmem:[%s1186_s4 + $0x68] sm:$0xff]  ;;  %v846_v41 = vld [vmem:[%s1186_s4 + $0x18] sm:$0xff]  ;;  %419 = vst.msk [vmem:[#allocation3] sm:$0x1] %vm418_vm5, %v968_v17  ;;  %vm425_vm6 = vcmask 64512  }
  0x1a   : > { %v396_v23 = vsel %vm318_vm0, %v389_v22, 0  ;;  %492 = vmatpush.bf16.msra.mxu3 %v852_v35  ;;  %v900_v47 = vld [vmem:[%s1185_s3] ss:$0 sm:$0xff]  ;;  %v850_v52 = vld [vmem:[%s1186_s4 + $0x38] sm:$0xff]  ;;  %v845_v54 = vld [vmem:[%s1186_s4 + $0x10] sm:$0xff]  ;;  %vm427_vm7 = vcmask 588800  }
  0x1b   : > { %v271_v6 = vmax.f32 %v269_v4, %v270_v5  ;;  %552 = vmatpush.bf16.msra.mxu0 %v856_v40  ;;  %v855_v53 = vld [vmem:[%s1186_s4 + $0x60] sm:$0xff]  ;;  %v849_v55 = vld [vmem:[%s1186_s4 + $0x30] sm:$0xff]  ;;  %v854_v56 = vld [vmem:[%s1186_s4 + $0x58] sm:$0xff]  ;;  %420 = vst.msk [vmem:[#allocation3 + $0x9] sm:$0x1] %vm418_vm5, %v968_v17  ;;  %vm429_vm8 = vcmask 654336  }
  0x1c   : > { %v844_v57 = vld [vmem:[%s1186_s4 + $0x8] sm:$0xff]  ;;  %v853_v59 = vld [vmem:[%s1186_s4 + $0x50] sm:$0xff]  ;;  %v843_v60 = vld [vmem:[%s1186_s4] sm:$0xff]  ;;  %s636_s28 = sshll.u32 %s632_s9, 4  ;;  %vm619_vm9 = vcmask 523264   ;;  %s622_s25 = scalar_lea.sflag [#allocation5], %s253_s13  ;;  %s637_s28 = int_to_ptr.hbm [resolvable:$true] %s636_s28 }
  0x1d   : > { %276 = vrot.lane.b32.xlu0 %v271_v6, %s967_s14  ;;  %328 = vmatpush.bf16.msra.mxu2 %v840_v15  ;;  %v848_v58 = vld [vmem:[%s1186_s4 + $0x28] sm:$0xff]  ;;  %s709_s14 = sshll.u32 %s253_s13, 3  ;;  %v901_v10 = vld [vmem:[%s1187_s5] ss:$0 sm:$0xff]  ;;  %s917_s29 = sshra.s32 %s637_s28, 4  ;;  %s918_s29 = int_to_ptr.hbm [resolvable:$true] %s917_s29 }
  0x1e   : > { %370 = vmatpush.bf16.msra.mxu1 %v842_v16  ;;  %493 = vmatpush.bf16.msra.mxu3 %v851_v39  ;;  %v902_v15 = vld [vmem:[%s263_s12] ss:$0 sm:$0xff]  ;;  %s255_s20 = scalar_lea.vmem [#allocation4], %s709_s14  ;;  %s919_s10 = scalar_lea.hbm %s918_s29, 8 }
  0x1f   : > { %553 = vmatpush.bf16.msra.mxu0 %v855_v53  ;;  %s634_s26 = sshll.u32 %s255_s20, 4  ;;  %p920_p11 = scmp.ne.s32.totalorder %s918_s29, %s919_s10  ;;  %s635_s26 = int_to_ptr.vmem [resolvable:$true] %s634_s26 }
  0x20   : > { %s923_s14 = scalar_lea.hbm %s1188_s6, 16  ;;  %p924_p0 = scmp.lt.s32.totalorder %s918_s29, %s1188_s6 }
  0x21   : > { %329 = vmatpush.bf16.msra.mxu2 %v839_v18  ;;  %p921_p12 = pnand %p920_p11, %p1043_p5  ;;  %p925_p1 = scmp.lt.s32.totalorder %s923_s14, %s919_s10 }
  0x22   : > { %371 = vmatpush.bf16.msra.mxu1 %v841_v19  ;;  %494 = vmatpush.bf16.msra.mxu3 %v850_v52 }
  0x23   : > { %554 = vmatpush.bf16.msra.mxu0 %v854_v56  ;;  %p922_p13 = pneg %p921_p12  ;;  %p926_p2 = por %p925_p1, %p924_p0 }
  0x25   : > { %403 = vmatpush.bf16.msrb.mxu2 %v396_v23  ;;  %p927_p3 = pnand %p926_p2, %p922_p13 }
  0x26   : > { %597 = vmatpush.bf16.msrb.mxu1 %v847_v37  ;;  %495 = vmatpush.bf16.msra.mxu3 %v849_v55 }
  0x27   : > { %555 = vmatpush.bf16.msra.mxu0 %v853_v59 }
  0x29   : > { %404 = vmatpush.bf16.msrb.mxu2 %v838_v24 }
  0x2a   : > { %598 = vmatpush.bf16.msrb.mxu1 %v846_v41  ;;  %496 = vmatpush.bf16.msra.mxu3 %v848_v58 }
  0x2d   : > { %405 = vmatpush.bf16.msrb.mxu2 %v837_v25 }
  0x2e   : > { %599 = vmatpush.bf16.msrb.mxu1 %v845_v54 }
  0x32   : > { %600 = vmatpush.bf16.msrb.mxu1 %v844_v57 }
  0x36   : > { %601 = vmatpush.bf16.msrb.mxu1 %v843_v60 }
  0x8f   : > { %v277_v26 = vpop.permute.xlu0 %276 }
  0x90   : > { %v280_v27 = vsel %vm279_vm2, 0.0, %v277_v26 }
  0x91   : > { %v282_v28 = vsel %vm281_vm3, %v280_v27, 0.0 }
  0x92   : > { %284 = vst.msk [vmem:[#allocation2 + $0x1] sm:$0xff] %vm283_vm4, %v282_v28 }
  0x99   : > { %v292_v29 = vld [vmem:[#allocation2 + $0x1] sm:$0xff] }
  0x9a   : > { %v335_v30 = vld [vmem:[#allocation2 + $0x2] sm:$0xff]  ;;  %v293_v31 = vpack.c.bf16 %v292_v29, %v292_v29 }
  0x9b   : > { %v336_v32 = vpack.c.bf16 %v335_v30, %v335_v30  ;;  %v285_v33 = vld [vmem:[#allocation2] sm:$0xff] }
  0x9c   : > { %725 = vmatmul.msk.bf16.vlgmr.msra.gmra.mxu2 %vm283_vm4, %v293_v31  ;;  %v286_v34 = vpack.c.bf16 %v285_v33, %v285_v33 }
  0x9d   : > { %739 = vmatmul.msk.bf16.vlgmr.msra.gmra.mxu1 %vm283_vm4, %v336_v32 }
  0xac   : > { %748 = vmatmul.msk.bf16.vlgmr.msrb.gmra.mxu2 %vm283_vm4, %v286_v34 }
 0x11a   : > { %v373_v38 = vpop.f32.mrf.mxu1 }
 0x11f   : > { %v331_v42 = vpop.f32.mrf.mxu2 }
 0x122   : > { %v375_v43 = vpop.f32.mrf.mxu1 }
 0x127   : > { %v333_v44 = vpop.f32.mrf.mxu2 }
 0x12f   : > { %v407_v45 = vpop.f32.mrf.mxu2 }
 0x130   : > { %v408_v46 = vadd.f32 %v407_v45, %v331_v42 }
 0x132   : > { %v411_v48 = vadd.f32 %v408_v46, %v373_v38 }
 0x134   : > { %v416_v49 = vadd.f32 %v900_v47, %v411_v48 }
 0x136   : > { %v417_v50 = vmax.f32 %v416_v49, 0.0 }
 0x137   : > { %v409_v51 = vpop.f32.mrf.mxu2 }
 0x138   : > { %422 = vrot.lane.b32.xlu0 %v417_v50, %s969_s19 }
 0x1aa   : > { %v423_v61 = vpop.permute.xlu0 %422 }
 0x1ab   : > { %v426_v62 = vsel %vm425_vm6, 0.0, %v423_v61 }
 0x1ac   : > { %v428_v63 = vsel %vm427_vm7, %v426_v62, 0.0 }
 0x1ad   : > { %430 = vst.msk [vmem:[#allocation3 + $0x1] sm:$0xff] %vm429_vm8, %v428_v63 }
 0x1b4   : > { %v443_v0 = vld [vmem:[#allocation3 + $0x1] sm:$0xff] }
 0x1b5   : > { %v502_v1 = vld [vmem:[#allocation3 + $0x2] sm:$0xff]  ;;  %v444_v3 = vpack.c.bf16 %v443_v0, %v443_v0 }
 0x1b6   : > { %v431_v2 = vld [vmem:[#allocation3] sm:$0xff]  ;;  %v503_v4 = vpack.c.bf16 %v502_v1, %v502_v1 }
 0x1b7   : > { %v432_v5 = vpack.c.bf16 %v431_v2, %v431_v2  ;;  %779 = vmatmul.msk.bf16.vlgmr.msra.gmra.mxu3 %vm429_vm8, %v444_v3 }
 0x1b8   : > { %810 = vmatmul.msk.bf16.vlgmr.msra.gmra.mxu0 %vm429_vm8, %v503_v4 }
 0x1b9   : > { %831 = vmatmul.msk.bf16.vlgmr.msrb.gmra.mxu1 %vm429_vm8, %v432_v5 }
 0x235   : > { %v557_v6 = vpop.f32.mrf.mxu0 }
 0x236   : > { %v603_v7 = vpop.f32.mrf.mxu1 }
 0x23a   : > { %v498_v8 = vpop.f32.mrf.mxu3 }
 0x23b   : > { %v604_v9 = vadd.f32 %v603_v7, %v498_v8 }
 0x23d   : > { %v559_v11 = vpop.f32.mrf.mxu0  ;;  %v607_v12 = vadd.f32 %v604_v9, %v557_v6 }
 0x23e   : > { %v605_v13 = vpop.f32.mrf.mxu1 }
 0x23f   : > { %v612_v14 = vadd.f32 %v901_v10, %v607_v12 }
 0x241   : > { %v613_v16 = vmax.f32 %v612_v14, 0.0 }
 0x242   : > { %v500_v17 = vpop.f32.mrf.mxu3 }
 0x243   : > { %v618_v18 = vadd.f32 %v902_v15, %v613_v16 }
 0x245   : > { %620 = vst.msk [vmem:[%s255_s20] sm:$0xff] %vm619_vm9, %v618_v18 }
 0x246   : > { %930 = shalt.err (!%p927_p3)
}
 0x247   : > { %858 = dma.vmem_to_hbm [thread:$0]  (%p1043_p5), %s635_s26, 128, %s637_s28, %s622_s25  }
 0x248 PF: > { %p864_p4 = scmp.ge.s32.totalorder %s965_s24, 2  ;;  %s648_s13 = sand.u32 1, %s953_s21  }
 0x249   : > { %s649_s17 = scalar_lea.sflag [#allocation5], %s648_s13 }
 0x24a   : > { %p861_p7 = pnand %p864_p4, %p1047_p6 }
 0x24c   : > { %p862_p8 = pneg %p861_p7 }
 0x24e   : > { %948 = dma.done.wait (%p862_p8), %s649_s17, 128  }
 0x24f   : > { %950 = vsyncadd (%p862_p8), %s649_s17, 4294967168  ;;  %p16_p9 = scmp.ge.s32.totalorder %s1030_s27, 4   ;;  %s1191_s21 = smov %s957_s22 }
 0x250   : > { %s1192_s22 = smov %s961_s23  ;;  %s1193_s23 = smov %s1041_s30 }
 0x251   : > { %s1194_s24 = smov %s1030_s27  ;;  %18 = sbr.rel (!%p16_p9) target bundleno = 3 (0x3), region = 86 }
 0x256   :  { %655 = vsyncpa [#allocation5], 1 }
 0x257   :  { %657 = vsyncpa [#allocation5 + $0x1], 1 }

</bundles_post_ra>
